<compile_context>
chip_gen: v5e
topology: v5e:2x2
jax: 0.10.0
libtpu: 0.0.40
codegen_flags: <defaults>
</compile_context>

<pallas_src>
import jax
import jax.numpy as jnp
from jax.experimental import pallas as pl
from jax.experimental.pallas import tpu as pltpu


def linear_kernel(x_ref, wt_ref, b_ref, o_ref):
    # y = x @ W_t + b with W_t already in [in_features, out_features] layout,
    # so this is a standard ((1,),(0,)) contraction -- no in-kernel transpose.
    x = x_ref[...]                        # (B, in_f)
    wt = wt_ref[...]                      # (in_f, out_f)
    acc = jnp.dot(x, wt, preferred_element_type=jnp.float32)   # (B, out_f), f32 acc
    o_ref[...] = (acc + b_ref[...]).astype(o_ref.dtype)        # bias (1, out_f) broadcasts
    # TODO(synk): the module defines self.relu but forward() never applies it,
    # so no ReLU is performed here (matches the PyTorch forward() exactly).


def linear_relu_forward(x, weight, bias):
    """x: [B, in_f], weight: [out_f, in_f] (PyTorch layout), bias: [out_f]."""
    B, in_f = x.shape
    out_f = weight.shape[0]

    # One-time wrapper-side layout prep (tiny constants; fold into params):
    #   - transpose W to [in_f, out_f] so the kernel contraction is standard
    #   - make bias 2-D (1, out_f) for a TPU-friendly (sublane, lane) layout
    w_t = weight.T
    b2 = bias.reshape(1, out_f)

    bytes_accessed = (
        x.size * x.dtype.itemsize
        + w_t.size * w_t.dtype.itemsize
        + b2.size * b2.dtype.itemsize
        + B * out_f * x.dtype.itemsize
    )
    cost = pl.CostEstimate(
        flops=2 * B * in_f * out_f,
        transcendentals=0,
        bytes_accessed=bytes_accessed,
    )

    return pl.pallas_call(
        linear_kernel,
        out_shape=jax.ShapeDtypeStruct((B, out_f), x.dtype),
        in_specs=[
            pl.BlockSpec(memory_space=pltpu.MemorySpace.VMEM),   # x
            pl.BlockSpec(memory_space=pltpu.MemorySpace.VMEM),   # weight.T
            pl.BlockSpec(memory_space=pltpu.MemorySpace.VMEM),   # bias (1, out_f)
        ],
        out_specs=pl.BlockSpec(memory_space=pltpu.MemorySpace.VMEM),
        cost_estimate=cost,
    )(x, w_t, b2)


if __name__ == "__main__":
    key = jax.random.PRNGKey(0)
    k_x, k_w, k_b = jax.random.split(key, 3)

    in_features = 5
    out_features = 5
    batch = 8

    # Deterministic parameter init mimicking torch.nn.Linear's uniform
    # initialization: U(-1/sqrt(in), 1/sqrt(in)).
    bound = 1.0 / jnp.sqrt(jnp.float32(in_features))
    weight = jax.random.uniform(
        k_w, (out_features, in_features), jnp.float32, -bound, bound
    )
    bias = jax.random.uniform(
        k_b, (out_features,), jnp.float32, -bound, bound
    )
    x = jax.random.normal(k_x, (batch, in_features), jnp.float32)

    y = linear_relu_forward(x, weight, bias)
    y = jax.block_until_ready(y)

    # Sanity-check against plain-JAX reference (no ReLU, per forward()).
    y_ref = x @ weight.T + bias
    assert y.shape == (batch, out_features)
    assert jnp.allclose(y, y_ref, atol=1e-5, rtol=1e-5)

    print("KERNEL_OK")
</pallas_src>

<mosaic_0001>
module attributes {stable_mosaic.version = 11 : i64} {
  func.func @linear_kernel(%arg0: memref<8x5xf32, #tpu.memory_space<vmem>>, %arg1: memref<5x5xf32, #tpu.memory_space<vmem>>, %arg2: memref<1x5xf32, #tpu.memory_space<vmem>>, %arg3: memref<8x5xf32, #tpu.memory_space<vmem>>) attributes {dimension_semantics = [], scalar_prefetch = 0 : i64, scratch_operands = 0 : i64, tpu.core_type = #tpu.core_type<tc>} {
    %c0 = arith.constant 0 : index
    %c0_0 = arith.constant 0 : index
    %0 = vector.load %arg0[%c0, %c0_0] : memref<8x5xf32, #tpu.memory_space<vmem>>, vector<8x5xf32>
    %c0_1 = arith.constant 0 : index
    %c0_2 = arith.constant 0 : index
    %1 = vector.load %arg1[%c0_1, %c0_2] : memref<5x5xf32, #tpu.memory_space<vmem>>, vector<5x5xf32>
    %cst = arith.constant dense<0.000000e+00> : vector<8x5xf32>
    %2 = tpu.matmul %0, %1, %cst {dimension_numbers = #tpu.dot_dimension_numbers<[1], [0], [0], [1], [0, 0, 1, 1], [], []>} : vector<8x5xf32>, vector<5x5xf32>, vector<8x5xf32> -> vector<8x5xf32>
    %c0_3 = arith.constant 0 : index
    %c0_4 = arith.constant 0 : index
    %3 = vector.load %arg2[%c0_3, %c0_4] : memref<1x5xf32, #tpu.memory_space<vmem>>, vector<1x5xf32>
    %4 = vector.broadcast %3 : vector<1x5xf32> to vector<8x5xf32>
    %5 = arith.addf %2, %4 : vector<8x5xf32>
    %c0_5 = arith.constant 0 : index
    %c0_6 = arith.constant 0 : index
    %6 = vector.load %arg3[%c0_5, %c0_6] : memref<8x5xf32, #tpu.memory_space<vmem>>, vector<8x5xf32>
    tpu.vector_store %arg3[%c0_5, %c0_6], %5 {strides = array<i32>} : memref<8x5xf32, #tpu.memory_space<vmem>>, vector<8x5xf32>,
    return
  }
}

</mosaic_0001>

<bundles_post_ra>
// kernel: tpu_custom_call.1
= control target key start
LH: loop header
LB: loop body
LE: loop exit
PB: predicated region body
PF: predicated region fallthrough
CT: control target
= control target key end

     0   :  { %8 = vsyncpa [#allocation3], 0  ;;  %s215_s0 = inlined_call_operand.hbm [shape: f32[8,5], index: 0, kind: input, shape index: {}]   ;;  %s216_s1 = inlined_call_operand.hbm [shape: f32[5,5], index: 1, kind: input, shape index: {}]   ;;  %s217_s2 = inlined_call_operand.vmem [shape: f32[1,5], index: 2, kind: input, shape index: {}]   ;;  %s218_s3 = inlined_call_operand.hbm [shape: f32[8,5], index: 3, kind: output, shape index: {}]  }
   0x1   :  { %9 = vsyncpa [#allocation6], 0 }
   0x2   :  { %10 = vsyncpa [#allocation4], 0  ;;  %s16_s14 = sshll.u32 %s215_s0, 4  ;;  %s180_s15 = smov [#allocation2]   ;;  %s17_s14 = int_to_ptr.hbm [resolvable:$true] %s16_s14 }
   0x3   :  { %s18_s16 = sshll.u32 %s180_s15, 4  ;;  %s27_s19 = sshll.u32 %s216_s1, 4  ;;  %s19_s16 = int_to_ptr.vmem [resolvable:$true] %s18_s16  ;;  %s28_s19 = int_to_ptr.hbm [resolvable:$true] %s27_s19 }
   0x4   :  { %21 = dma.hbm_to_vmem [thread:$0]  %s17_s14, 128, %s19_s16, [#allocation3]  }
   0x5   :  { %s181_s20 = smov [#allocation5]  }
   0x6   :  { %s29_s21 = sshll.u32 %s181_s20, 4  ;;  %s30_s21 = int_to_ptr.vmem [resolvable:$true] %s29_s21 }
   0x7   :  { %32 = dma.hbm_to_vmem [thread:$0]  %s28_s19, 128, %s30_s21, [#allocation6]  }
   0x8   :  { %174 = dma.done.wait [#allocation3], 128  }
   0x9   :  { %175 = vsyncadd [#allocation3], 4294967168 }
   0xa   :  { %176 = dma.done.wait [#allocation6], 128  }
   0xb   :  { %177 = vsyncadd [#allocation6], 4294967168  ;;  %vm53_vm0 = vcmask 1044480   ;;  %vm49_vm1 = vcmask 39936   ;;  %v44_v0 = vld [vmem:[#allocation5] sm:$0x1f] }
   0xc   :  { %v43_v1 = vld [vmem:[#allocation2] sm:$0xff]  ;;  %96 = vmatpush.msk.msra.mxu0 %vm53_vm0, %v44_v0  ;;  %s182_s1 = smov [#allocation7]   ;;  %s85_s26 = sshll.u32 %s218_s3, 4  ;;  %s86_s26 = int_to_ptr.hbm [resolvable:$true] %s85_s26 }
   0xd   :  { %97 = vmatmul.msk.f32.vlgmr.msra.gmra.mxu0 %vm49_vm1, %v43_v1  ;;  %v101_v2 = vld [vmem:[%s217_s2] ss:$0 sm:$0xff]  ;;  %s83_s23 = sshll.u32 %s182_s1, 4  ;;  %s84_s23 = int_to_ptr.vmem [resolvable:$true] %s83_s23 }
  0x8a   :  { %v74_v3 = vpop.f32.mrf.mxu0 }
  0x8b   :  { %v75_v4 = vadd.f32 %v101_v2, %v74_v3 }
  0x8d   :  { %77 = vst.msk [vmem:[#allocation7] sm:$0xff] %vm49_vm1, %v75_v4 }
  0x8e   :  { %88 = dma.vmem_to_hbm [thread:$0]  %s84_s23, 128, %s86_s26, [#allocation4]  }
  0x8f   :  { %178 = dma.done.wait [#allocation4], 128  }
  0x90   :  { %179 = vsyncadd [#allocation4], 4294967168 }
  0x91   :  { %93 = vsyncpa [#allocation3], 1 }
  0x92   :  { %94 = vsyncpa [#allocation6], 1 }
  0x93   :  { %95 = vsyncpa [#allocation4], 1 }

</bundles_post_ra>
